<compile_context>
chip_gen: v6e
topology: v6e:2x2x1
jax: 0.10.0
libtpu: 0.0.40
codegen_flags: <defaults>
</compile_context>

<pallas_src>
import jax
import jax.numpy as jnp
from jax.experimental import pallas as pl
from jax.experimental.pallas import tpu as pltpu


def _round_up(x, m):
    return ((x + m - 1) // m) * m


def double_dense_kernel(x_ref, w1_ref, b1_ref, w2_ref, b2_ref, w3_ref, b3_ref, o_ref):
    # Cast x in-register (it streams from HBM in its native dtype); all matmuls run on the
    # MXU in bf16 with f32 accumulation, bias-add / ReLU stay in f32.
    x = x_ref[...].astype(w1_ref.dtype)
    h1 = jnp.dot(x, w1_ref[...], preferred_element_type=jnp.float32)
    h1 = jnp.maximum(h1 + b1_ref[...], 0.0)
    h2 = jnp.dot(h1.astype(w2_ref.dtype), w2_ref[...], preferred_element_type=jnp.float32)
    h2 = jnp.maximum(h2 + b2_ref[...], 0.0)
    out = jnp.dot(h2.astype(w3_ref.dtype), w3_ref[...], preferred_element_type=jnp.float32)
    o_ref[...] = (out + b3_ref[...]).astype(o_ref.dtype)


def double_dense(x, params, *, tile_n=1024, compute_dtype=jnp.bfloat16):
    """x: (N, C, H, W) (or already (N, D)).  params: (in,out)-layout weights, (1,out) biases."""
    n = x.shape[0]
    x_flat = x.reshape(n, -1)                     # matches x.view(x.size(0), -1)
    d = x_flat.shape[1]

    w1, b1 = params["w1"], params["b1"]
    w2, b2 = params["w2"], params["b2"]
    w3, b3 = params["w3"], params["b3"]
    out_features = w3.shape[1]

    # --- lane-dense output: pad the last layer's out dim to a 128 multiple (unmasked vst) ---
    out_pad = _round_up(out_features, 128)
    w3p = jnp.zeros((w3.shape[0], out_pad), w3.dtype).at[:, :out_features].set(w3)
    b3p = jnp.zeros((1, out_pad), b3.dtype).at[:, :out_features].set(b3)

    # Weights in bf16 (one-time tiny cast; MXU-native), biases kept f32 for f32 elementwise.
    w1_c = w1.astype(compute_dtype)
    w2_c = w2.astype(compute_dtype)
    w3_c = w3p.astype(compute_dtype)
    b1_f = b1.astype(jnp.float32)
    b2_f = b2.astype(jnp.float32)
    b3_f = b3p.astype(jnp.float32)

    out_dtype = jnp.bfloat16                       # halved writeback; wrapper casts back to f32
    x_item = jnp.dtype(x_flat.dtype).itemsize      # x streams in its native dtype
    w_item = jnp.dtype(compute_dtype).itemsize
    o_item = jnp.dtype(out_dtype).itemsize

    # --- derive the batch tile from a generation-dependent VMEM budget ---
    try:
        vmem_physical = int(pltpu.get_tpu_info().vmem_capacity_bytes)
    except Exception:
        vmem_physical = 64 << 20                   # conservative fallback (v7x per-core size)
    vmem_cap = vmem_physical * 3 // 4              # ~96 MiB on v5e/v6e, ~48 MiB on v7x

    weight_bytes = ((w1_c.size + w2_c.size + w3_c.size) * w_item
                    + (b1_f.size + b2_f.size + b3_f.size) * 4)    # single-buffered residency
    per_row = 2 * d * x_item + 2 * out_pad * o_item               # x + out double-buffers
    budget = vmem_cap - weight_bytes - (2 << 20)                  # leave ~2 MiB slack
    tn_budget = max((budget // per_row) // 16 * 16, 16)
    tn = max(16, min(int(tile_n) // 16 * 16, int(tn_budget)))
    # TODO(synk): for extreme flattened d (x tile no longer fits VMEM even at tn=16), add a
    # K-reduction grid axis over d with an f32 VMEM accumulator instead of shrinking tn.

    # Keep >= 2 grid steps when there's enough work so both v7x TensorCores get a share.
    if n <= tn:
        if n >= 512:
            tn = _round_up((n + 1) // 2, 16)
        else:
            tn = _round_up(max(n, 1), 16)

    # Pad the batch only when n is smaller than one aligned tile (tiny copy); for larger,
    # non-divisible n the ragged last block is handled by Pallas boundary clipping.
    if n < tn:
        x_in = jnp.pad(x_flat, ((0, tn - n), (0, 0)))
    else:
        x_in = x_flat
    n_rows = x_in.shape[0]
    grid = (pl.cdiv(n_rows, tn),)

    # VMEM limit: actual requirement (weights conservatively counted double-buffered) with
    # headroom, clamped to the generation-dependent cap.
    vmem_need = 2 * weight_bytes + tn * per_row
    vmem_limit = int(min(max(int(vmem_need * 1.5), 16 << 20), vmem_cap))

    const_map = lambda i: (0, 0)   # weights/biases: VMEM-resident, never re-DMA'd
    resident = dict(index_map=const_map, pipeline_mode=pl.Buffered(1))

    out_padded = pl.pallas_call(
        double_dense_kernel,
        out_shape=jax.ShapeDtypeStruct((n_rows, out_pad), out_dtype),
        grid=grid,
        in_specs=[
            # x: streamed over the batch (default double-buffered pipeline).
            # If a profile shows exposed DMA, deepen with pipeline_mode=pl.Buffered(3).
            pl.BlockSpec((tn, d), lambda i: (i, 0)),
            pl.BlockSpec(w1_c.shape, **resident),
            pl.BlockSpec(b1_f.shape, **resident),
            pl.BlockSpec(w2_c.shape, **resident),
            pl.BlockSpec(b2_f.shape, **resident),
            pl.BlockSpec(w3_c.shape, **resident),
            pl.BlockSpec(b3_f.shape, **resident),
        ],
        out_specs=pl.BlockSpec((tn, out_pad), lambda i: (i, 0)),
        compiler_params=pltpu.CompilerParams(
            dimension_semantics=("parallel",),
            vmem_limit_bytes=vmem_limit,
        ),
    )(x_in, w1_c, b1_f, w2_c, b2_f, w3_c, b3_f)

    # Strip batch padding + lane padding; return f32 like the PyTorch module.
    return out_padded[:n, :out_features].astype(jnp.float32)


def init_params(key, in_channels, hidden_neurons, output_channels):
    """Weights stored (in_features, out_features) so the kernel does x @ W directly."""
    h2 = hidden_neurons // 2
    k1, k2, k3, k4, k5, k6 = jax.random.split(key, 6)

    def uniform(k, shape, fan_in):
        bound = 1.0 / jnp.sqrt(fan_in)
        return jax.random.uniform(k, shape, jnp.float32, -bound, bound)

    return {
        "w1": uniform(k1, (in_channels, hidden_neurons), in_channels),
        "b1": uniform(k2, (1, hidden_neurons), in_channels),
        "w2": uniform(k3, (hidden_neurons, h2), hidden_neurons),
        "b2": uniform(k4, (1, h2), hidden_neurons),
        "w3": uniform(k5, (h2, output_channels), h2),
        "b3": uniform(k6, (1, output_channels), h2),
    }


def double_dense_ref(x, params):
    """Pure-JAX f32 reference for correctness checking."""
    h = x.reshape(x.shape[0], -1)
    h = jnp.maximum(h @ params["w1"] + params["b1"], 0.0)
    h = jnp.maximum(h @ params["w2"] + params["b2"], 0.0)
    return h @ params["w3"] + params["b3"]


if __name__ == "__main__":
    key = jax.random.PRNGKey(0)
    kx, kp = jax.random.split(key)

    # Small shapes consistent with the module: NCHW input flattened per-sample.
    batch, channels, spatial = 2, 4, 16
    in_channels = channels * spatial * spatial   # 1024 flattened features
    hidden_neurons = 32
    output_channels = 4

    x = jax.random.normal(kx, (batch, channels, spatial, spatial), jnp.float32)
    params = init_params(kp, in_channels, hidden_neurons, output_channels)

    out = double_dense(x, params)
    out = jax.block_until_ready(out)

    ref = double_dense_ref(x, params)
    assert out.shape == (batch, output_channels)
    # bf16 matmul path + bf16 writeback -> loosened tolerance vs the f32 reference
    assert jnp.allclose(out, ref, atol=3e-2, rtol=3e-2), "mismatch vs pure-JAX reference"

    print("KERNEL_OK")
</pallas_src>

<mosaic_0001>
module attributes {stable_mosaic.version = 11 : i64} {
  func.func @double_dense_kernel(%arg0: i32, %arg1: memref<16x1024xf32, #tpu.memory_space<vmem>>, %arg2: memref<1024x32xbf16, #tpu.memory_space<vmem>>, %arg3: memref<1x32xf32, #tpu.memory_space<vmem>>, %arg4: memref<32x16xbf16, #tpu.memory_space<vmem>>, %arg5: memref<1x16xf32, #tpu.memory_space<vmem>>, %arg6: memref<16x128xbf16, #tpu.memory_space<vmem>>, %arg7: memref<1x128xf32, #tpu.memory_space<vmem>>, %arg8: memref<16x128xbf16, #tpu.memory_space<vmem>>) attributes {dimension_semantics = [#tpu.dimension_semantics<parallel>], iteration_bounds = array<i64: 1>, scalar_prefetch = 0 : i64, scratch_operands = 0 : i64, tpu.core_type = #tpu.core_type<tc>, window_params = [{transform_indices = @transform_0, window_bounds = array<i64: 16, 1024>}, {pipeline_mode = #tpu.pipeline_mode<synchronous>, transform_indices = @transform_1, window_bounds = array<i64: 1024, 32>}, {pipeline_mode = #tpu.pipeline_mode<synchronous>, transform_indices = @transform_2, window_bounds = array<i64: 1, 32>}, {pipeline_mode = #tpu.pipeline_mode<synchronous>, transform_indices = @transform_3, window_bounds = array<i64: 32, 16>}, {pipeline_mode = #tpu.pipeline_mode<synchronous>, transform_indices = @transform_4, window_bounds = array<i64: 1, 16>}, {pipeline_mode = #tpu.pipeline_mode<synchronous>, transform_indices = @transform_5, window_bounds = array<i64: 16, 128>}, {pipeline_mode = #tpu.pipeline_mode<synchronous>, transform_indices = @transform_6, window_bounds = array<i64: 1, 128>}, {transform_indices = @transform_7, window_bounds = array<i64: 16, 128>}]} {
    %c0 = arith.constant 0 : index
    %c0_0 = arith.constant 0 : index
    %0 = vector.load %arg1[%c0, %c0_0] : memref<16x1024xf32, #tpu.memory_space<vmem>>, vector<16x1024xf32>
    %1 = arith.truncf %0 : vector<16x1024xf32> to vector<16x1024xbf16>
    %c0_1 = arith.constant 0 : index
    %c0_2 = arith.constant 0 : index
    %2 = vector.load %arg2[%c0_1, %c0_2] : memref<1024x32xbf16, #tpu.memory_space<vmem>>, vector<1024x32xbf16>
    %cst = arith.constant dense<0.000000e+00> : vector<16x32xf32>
    %3 = tpu.matmul %1, %2, %cst {dimension_numbers = #tpu.dot_dimension_numbers<[1], [0], [0], [1], [0, 0, 1, 1], [], []>} : vector<16x1024xbf16>, vector<1024x32xbf16>, vector<16x32xf32> -> vector<16x32xf32>
    %c0_3 = arith.constant 0 : index
    %c0_4 = arith.constant 0 : index
    %4 = vector.load %arg3[%c0_3, %c0_4] : memref<1x32xf32, #tpu.memory_space<vmem>>, vector<1x32xf32>
    %5 = vector.broadcast %4 : vector<1x32xf32> to vector<16x32xf32>
    %6 = arith.addf %3, %5 : vector<16x32xf32>
    %cst_5 = arith.constant 0.000000e+00 : f32
    %7 = vector.broadcast %cst_5 : f32 to vector<16x32xf32>
    %8 = arith.maximumf %6, %7 : vector<16x32xf32>
    %9 = arith.truncf %8 : vector<16x32xf32> to vector<16x32xbf16>
    %c0_6 = arith.constant 0 : index
    %c0_7 = arith.constant 0 : index
    %10 = vector.load %arg4[%c0_6, %c0_7] : memref<32x16xbf16, #tpu.memory_space<vmem>>, vector<32x16xbf16>
    %cst_8 = arith.constant dense<0.000000e+00> : vector<16x16xf32>
    %11 = tpu.matmul %9, %10, %cst_8 {dimension_numbers = #tpu.dot_dimension_numbers<[1], [0], [0], [1], [0, 0, 1, 1], [], []>} : vector<16x32xbf16>, vector<32x16xbf16>, vector<16x16xf32> -> vector<16x16xf32>
    %c0_9 = arith.constant 0 : index
    %c0_10 = arith.constant 0 : index
    %12 = vector.load %arg5[%c0_9, %c0_10] : memref<1x16xf32, #tpu.memory_space<vmem>>, vector<1x16xf32>
    %13 = vector.broadcast %12 : vector<1x16xf32> to vector<16x16xf32>
    %14 = arith.addf %11, %13 : vector<16x16xf32>
    %cst_11 = arith.constant 0.000000e+00 : f32
    %15 = vector.broadcast %cst_11 : f32 to vector<16x16xf32>
    %16 = arith.maximumf %14, %15 : vector<16x16xf32>
    %17 = arith.truncf %16 : vector<16x16xf32> to vector<16x16xbf16>
    %c0_12 = arith.constant 0 : index
    %c0_13 = arith.constant 0 : index
    %18 = vector.load %arg6[%c0_12, %c0_13] : memref<16x128xbf16, #tpu.memory_space<vmem>>, vector<16x128xbf16>
    %cst_14 = arith.constant dense<0.000000e+00> : vector<16x128xf32>
    %19 = tpu.matmul %17, %18, %cst_14 {dimension_numbers = #tpu.dot_dimension_numbers<[1], [0], [0], [1], [0, 0, 1, 1], [], []>} : vector<16x16xbf16>, vector<16x128xbf16>, vector<16x128xf32> -> vector<16x128xf32>
    %c0_15 = arith.constant 0 : index
    %c0_16 = arith.constant 0 : index
    %20 = vector.load %arg7[%c0_15, %c0_16] : memref<1x128xf32, #tpu.memory_space<vmem>>, vector<1x128xf32>
    %21 = vector.broadcast %20 : vector<1x128xf32> to vector<16x128xf32>
    %22 = arith.addf %19, %21 : vector<16x128xf32>
    %23 = arith.truncf %22 : vector<16x128xf32> to vector<16x128xbf16>
    %c0_17 = arith.constant 0 : index
    %c0_18 = arith.constant 0 : index
    %24 = vector.load %arg8[%c0_17, %c0_18] : memref<16x128xbf16, #tpu.memory_space<vmem>>, vector<16x128xbf16>
    tpu.vector_store %arg8[%c0_17, %c0_18], %23 {strides = array<i32>} : memref<16x128xbf16, #tpu.memory_space<vmem>>, vector<16x128xbf16>,
    return
  }
  func.func @transform_0(%arg0: i32) -> (i32, i32) {
    %c0_i32 = arith.constant 0 : i32
    %c0_i32_0 = arith.constant 0 : i32
    return %arg0, %c0_i32 : i32, i32
  }
  func.func @transform_1(%arg0: i32) -> (i32, i32) {
    %c0_i32 = arith.constant 0 : i32
    %c0_i32_0 = arith.constant 0 : i32
    %c0_i32_1 = arith.constant 0 : i32
    return %c0_i32, %c0_i32_0 : i32, i32
  }
  func.func @transform_2(%arg0: i32) -> (i32, i32) {
    %c0_i32 = arith.constant 0 : i32
    %c0_i32_0 = arith.constant 0 : i32
    %c0_i32_1 = arith.constant 0 : i32
    return %c0_i32, %c0_i32_0 : i32, i32
  }
  func.func @transform_3(%arg0: i32) -> (i32, i32) {
    %c0_i32 = arith.constant 0 : i32
    %c0_i32_0 = arith.constant 0 : i32
    %c0_i32_1 = arith.constant 0 : i32
    return %c0_i32, %c0_i32_0 : i32, i32
  }
  func.func @transform_4(%arg0: i32) -> (i32, i32) {
    %c0_i32 = arith.constant 0 : i32
    %c0_i32_0 = arith.constant 0 : i32
    %c0_i32_1 = arith.constant 0 : i32
    return %c0_i32, %c0_i32_0 : i32, i32
  }
  func.func @transform_5(%arg0: i32) -> (i32, i32) {
    %c0_i32 = arith.constant 0 : i32
    %c0_i32_0 = arith.constant 0 : i32
    %c0_i32_1 = arith.constant 0 : i32
    return %c0_i32, %c0_i32_0 : i32, i32
  }
  func.func @transform_6(%arg0: i32) -> (i32, i32) {
    %c0_i32 = arith.constant 0 : i32
    %c0_i32_0 = arith.constant 0 : i32
    %c0_i32_1 = arith.constant 0 : i32
    return %c0_i32, %c0_i32_0 : i32, i32
  }
  func.func @transform_7(%arg0: i32) -> (i32, i32) {
    %c0_i32 = arith.constant 0 : i32
    %c0_i32_0 = arith.constant 0 : i32
    return %arg0, %c0_i32 : i32, i32
  }
}

</mosaic_0001>

<bundles_post_ra>
// kernel: tpu_custom_call.1
= control target key start
LH: loop header
LB: loop body
LE: loop exit
PB: predicated region body
PF: predicated region fallthrough
CT: control target
= control target key end

     0   :  { %s1483_s0 = inlined_call_operand.vmem [shape: f32[16,1024], index: 0, kind: input, shape index: {}]   ;;  %s1484_s1 = inlined_call_operand.vmem [shape: bf16[1024,32], index: 1, kind: input, shape index: {}]   ;;  %s1485_s2 = inlined_call_operand.vmem [shape: f32[1,32], index: 2, kind: input, shape index: {}]   ;;  %s1486_s3 = inlined_call_operand.vmem [shape: bf16[32,16], index: 3, kind: input, shape index: {}]   ;;  %s1487_s4 = inlined_call_operand.vmem [shape: f32[1,16], index: 4, kind: input, shape index: {}]   ;;  %s1488_s5 = inlined_call_operand.vmem [shape: bf16[16,128], index: 5, kind: input, shape index: {}]   ;;  %s1489_s6 = inlined_call_operand.vmem [shape: f32[1,128], index: 6, kind: input, shape index: {}]   ;;  %s1490_s7 = inlined_call_operand.hbm [shape: bf16[16,128], index: 7, kind: output, shape index: {}]  }
   0x1   :  { %v1088_v0 = vld [vmem:[%s1484_s1 + $0x78] sm:$0xff]   ;;  %v1092_v4 = vld [vmem:[%s1484_s1 + $0x70] sm:$0xff]   ;;  %v1096_v8 = vld [vmem:[%s1484_s1 + $0x68] sm:$0xff]  }
   0x2   :  { %v1089_v1 = vld [vmem:[%s1484_s1 + $0xf8] sm:$0xff]   ;;  %976 = vmatprep.subr.bf16.mxu0 %v1088_v0  ;;  %v1093_v5 = vld [vmem:[%s1484_s1 + $0xf0] sm:$0xff]   ;;  %v1097_v9 = vld [vmem:[%s1484_s1 + $0xe8] sm:$0xff]  }
   0x3   :  { %v1090_v2 = vld [vmem:[%s1484_s1 + $0x38] sm:$0xff]   ;;  %998 = vmatprep.subr.bf16.mxu1 %v1089_v1  ;;  %v1094_v6 = vld [vmem:[%s1484_s1 + $0x30] sm:$0xff]   ;;  %v1098_v10 = vld [vmem:[%s1484_s1 + $0x28] sm:$0xff]  }
   0x4   :  { %v1091_v3 = vld [vmem:[%s1484_s1 + $0xb8] sm:$0xff]   ;;  %977 = vmatpush3.bf16.msra.mxu0 %v1090_v2  ;;  %v1095_v7 = vld [vmem:[%s1484_s1 + $0xb0] sm:$0xff]   ;;  %v1099_v11 = vld [vmem:[%s1484_s1 + $0xa8] sm:$0xff]  }
   0x5   :  { %999 = vmatpush3.bf16.msra.mxu1 %v1091_v3  ;;  %978 = vmatprep.subr.bf16.mxu0 %v1092_v4  ;;  %v1100_v12 = vld [vmem:[%s1484_s1 + $0x60] sm:$0xff]   ;;  %v1104_v16 = vld [vmem:[%s1484_s1 + $0x58] sm:$0xff]   ;;  %v1108_v20 = vld [vmem:[%s1484_s1 + $0x50] sm:$0xff]  }
   0x6   :  { %1000 = vmatprep.subr.bf16.mxu1 %v1093_v5  ;;  %v1101_v13 = vld [vmem:[%s1484_s1 + $0xe0] sm:$0xff]   ;;  %v1105_v17 = vld [vmem:[%s1484_s1 + $0xd8] sm:$0xff]   ;;  %v1109_v21 = vld [vmem:[%s1484_s1 + $0xd0] sm:$0xff]  }
   0x7   :  { %v1102_v14 = vld [vmem:[%s1484_s1 + $0x20] sm:$0xff]   ;;  %v1106_v18 = vld [vmem:[%s1484_s1 + $0x18] sm:$0xff]   ;;  %v1110_v22 = vld [vmem:[%s1484_s1 + $0x10] sm:$0xff]  }
   0x8   :  { %979 = vmatpush3.bf16.msra.mxu0 %v1094_v6  ;;  %v1103_v15 = vld [vmem:[%s1484_s1 + $0xa0] sm:$0xff]   ;;  %v1107_v19 = vld [vmem:[%s1484_s1 + $0x98] sm:$0xff]   ;;  %v1111_v23 = vld [vmem:[%s1484_s1 + $0x90] sm:$0xff]  }
   0x9   :  { %1001 = vmatpush3.bf16.msra.mxu1 %v1095_v7  ;;  %980 = vmatprep.subr.bf16.mxu0 %v1096_v8  ;;  %v1112_v24 = vld [vmem:[%s1484_s1 + $0x48] sm:$0xff]   ;;  %v1116_v28 = vld [vmem:[%s1484_s1 + $0x40] sm:$0xff]   ;;  %v31_v34 = vld [vmem:[%s1483_s0 + $0x18] sm:$0xff] }
   0xa   :  { %1002 = vmatprep.subr.bf16.mxu1 %v1097_v9  ;;  %v1113_v25 = vld [vmem:[%s1484_s1 + $0xc8] sm:$0xff]   ;;  %v1117_v29 = vld [vmem:[%s1484_s1 + $0xc0] sm:$0xff]   ;;  %v39_v36 = vld [vmem:[%s1483_s0 + $0x58] sm:$0xff] }
   0xb   :  { %v1114_v26 = vld [vmem:[%s1484_s1 + $0x8] sm:$0xff]   ;;  %v1118_v30 = vld [vmem:[%s1484_s1] sm:$0xff]   ;;  %v47_v39 = vpack.c.bf16 %v39_v36, %v31_v34  ;;  %v30_v41 = vld [vmem:[%s1483_s0 + $0x10] sm:$0xff] }
   0xc   :  { %981 = vmatpush3.bf16.msra.mxu0 %v1098_v10  ;;  %v1115_v27 = vld [vmem:[%s1484_s1 + $0x88] sm:$0xff]   ;;  %v1119_v31 = vld [vmem:[%s1484_s1 + $0x80] sm:$0xff]   ;;  %v38_v42 = vld [vmem:[%s1483_s0 + $0x50] sm:$0xff] }
   0xd   :  { %1003 = vmatpush3.bf16.msra.mxu1 %v1099_v11  ;;  %982 = vmatprep.subr.bf16.mxu0 %v1100_v12  ;;  %v29_v32 = vld [vmem:[%s1483_s0 + $0x8] sm:$0xff]  ;;  %v28_v37 = vld [vmem:[%s1483_s0] sm:$0xff]  ;;  %v46_v43 = vpack.c.bf16 %v38_v42, %v30_v41  ;;  %v1120_v44 = vld [vmem:[%s1484_s1 + $0x178] sm:$0xff]  }
   0xe   :  { %1004 = vmatprep.subr.bf16.mxu1 %v1101_v13  ;;  %v37_v33 = vld [vmem:[%s1483_s0 + $0x48] sm:$0xff]  ;;  %v36_v38 = vld [vmem:[%s1483_s0 + $0x40] sm:$0xff]  ;;  %644 = vmatprep.mubr.bf16.mxu1 %v47_v39  ;;  %v1121_v45 = vld [vmem:[%s1484_s1 + $0x1f8] sm:$0xff]  }
   0xf   :  { %v45_v35 = vpack.c.bf16 %v37_v33, %v29_v32  ;;  %v44_v40 = vpack.c.bf16 %v36_v38, %v28_v37  ;;  %v1122_v46 = vld [vmem:[%s1484_s1 + $0x138] sm:$0xff]   ;;  %v1124_v48 = vld [vmem:[%s1484_s1 + $0x170] sm:$0xff]   ;;  %v1128_v52 = vld [vmem:[%s1484_s1 + $0x168] sm:$0xff]  }
  0x10   :  { %983 = vmatpush3.bf16.msra.mxu0 %v1102_v14  ;;  %v1123_v47 = vld [vmem:[%s1484_s1 + $0x1b8] sm:$0xff]   ;;  %v1125_v49 = vld [vmem:[%s1484_s1 + $0x1f0] sm:$0xff]   ;;  %v1129_v53 = vld [vmem:[%s1484_s1 + $0x1e8] sm:$0xff]  }
  0x11   :  { %1005 = vmatpush3.bf16.msra.mxu1 %v1103_v15  ;;  %984 = vmatprep.subr.bf16.mxu0 %v1104_v16  ;;  %v1126_v50 = vld [vmem:[%s1484_s1 + $0x130] sm:$0xff]   ;;  %v1130_v54 = vld [vmem:[%s1484_s1 + $0x128] sm:$0xff]   ;;  %v1132_v56 = vld [vmem:[%s1484_s1 + $0x160] sm:$0xff]  }
  0x12   :  { %1006 = vmatprep.subr.bf16.mxu1 %v1105_v17  ;;  %603 = vmatprep.mubr.bf16.mxu0 %v45_v35  ;;  %v1127_v51 = vld [vmem:[%s1484_s1 + $0x1b0] sm:$0xff]   ;;  %v1131_v55 = vld [vmem:[%s1484_s1 + $0x1a8] sm:$0xff]   ;;  %v1133_v57 = vld [vmem:[%s1484_s1 + $0x1e0] sm:$0xff]  }
  0x13   :  { %v1134_v58 = vld [vmem:[%s1484_s1 + $0x120] sm:$0xff]   ;;  %v1136_v60 = vld [vmem:[%s1484_s1 + $0x158] sm:$0xff]   ;;  %v1140_v0 = vld [vmem:[%s1484_s1 + $0x150] sm:$0xff]  }
  0x14   :  { %985 = vmatpush3.bf16.msra.mxu0 %v1106_v18  ;;  %v1135_v59 = vld [vmem:[%s1484_s1 + $0x1a0] sm:$0xff]   ;;  %v1137_v61 = vld [vmem:[%s1484_s1 + $0x1d8] sm:$0xff]   ;;  %v1141_v1 = vld [vmem:[%s1484_s1 + $0x1d0] sm:$0xff]  }
  0x15   :  { %1007 = vmatpush3.bf16.msra.mxu1 %v1107_v19  ;;  %986 = vmatprep.subr.bf16.mxu0 %v1108_v20  ;;  %v1138_v62 = vld [vmem:[%s1484_s1 + $0x118] sm:$0xff]   ;;  %v1142_v2 = vld [vmem:[%s1484_s1 + $0x110] sm:$0xff]   ;;  %v1144_v4 = vld [vmem:[%s1484_s1 + $0x148] sm:$0xff]  }
  0x16   :  { %1008 = vmatprep.subr.bf16.mxu1 %v1109_v21  ;;  %v1139_v63 = vld [vmem:[%s1484_s1 + $0x198] sm:$0xff]   ;;  %v1143_v3 = vld [vmem:[%s1484_s1 + $0x190] sm:$0xff]   ;;  %v1145_v5 = vld [vmem:[%s1484_s1 + $0x1c8] sm:$0xff]  }
  0x17   :  { %v1146_v6 = vld [vmem:[%s1484_s1 + $0x108] sm:$0xff]   ;;  %v1148_v8 = vld [vmem:[%s1484_s1 + $0x140] sm:$0xff]   ;;  %v35_v14 = vld [vmem:[%s1483_s0 + $0x38] sm:$0xff] }
  0x18   :  { %987 = vmatpush3.bf16.msra.mxu0 %v1110_v22  ;;  %v1147_v7 = vld [vmem:[%s1484_s1 + $0x188] sm:$0xff]   ;;  %v1149_v9 = vld [vmem:[%s1484_s1 + $0x1c0] sm:$0xff]   ;;  %v43_v15 = vld [vmem:[%s1483_s0 + $0x78] sm:$0xff] }
  0x19   :  { %1009 = vmatpush3.bf16.msra.mxu1 %v1111_v23  ;;  %988 = vmatprep.subr.bf16.mxu0 %v1112_v24  ;;  %v1150_v10 = vld [vmem:[%s1484_s1 + $0x100] sm:$0xff]   ;;  %v33_v12 = vld [vmem:[%s1483_s0 + $0x28] sm:$0xff]  ;;  %v51_v17 = vpack.c.bf16 %v43_v15, %v35_v14  ;;  %v34_v20 = vld [vmem:[%s1483_s0 + $0x30] sm:$0xff] }
  0x1a   :  { %1010 = vmatprep.subr.bf16.mxu1 %v1113_v25  ;;  %v1151_v11 = vld [vmem:[%s1484_s1 + $0x180] sm:$0xff]   ;;  %v41_v13 = vld [vmem:[%s1483_s0 + $0x68] sm:$0xff]  ;;  %v42_v22 = vld [vmem:[%s1483_s0 + $0x70] sm:$0xff] }
  0x1b   :  { %v49_v16 = vpack.c.bf16 %v41_v13, %v33_v12  ;;  %v32_v18 = vld [vmem:[%s1483_s0 + $0x20] sm:$0xff]  ;;  %v50_v23 = vpack.c.bf16 %v42_v22, %v34_v20 }
  0x1c   :  { %989 = vmatpush3.bf16.msra.mxu0 %v1114_v26  ;;  %v40_v19 = vld [vmem:[%s1483_s0 + $0x60] sm:$0xff] }
  0x1d   :  { %1011 = vmatpush3.bf16.msra.mxu1 %v1115_v27  ;;  %990 = vmatprep.subr.bf16.mxu0 %v1116_v28  ;;  %v48_v21 = vpack.c.bf16 %v40_v19, %v32_v18 }
  0x1e   :  { %1012 = vmatprep.subr.bf16.mxu1 %v1117_v29 }
  0x20   :  { %991 = vmatpush3.bf16.msra.mxu0 %v1118_v30 }
  0x21   :  { %1013 = vmatpush3.bf16.msra.mxu1 %v1119_v31  ;;  %1020 = vmatprep.subr.bf16.mxu0 %v1120_v44 }
  0x22   :  { %1042 = vmatprep.subr.bf16.mxu1 %v1121_v45 }
  0x23   :  { %604 = vmatmul.mubr.bf16.vlgmr.msra.gmra.mxu0 %v44_v40 }
  0x24   :  { %645 = vmatmul.mubr.bf16.vlgmr.msra.gmra.mxu1 %v46_v43  ;;  %1021 = vmatpush3.bf16.msra.mxu0 %v1122_v46 }
  0x25   :  { %1043 = vmatpush3.bf16.msra.mxu1 %v1123_v47  ;;  %1022 = vmatprep.subr.bf16.mxu0 %v1124_v48 }
  0x26   :  { %1044 = vmatprep.subr.bf16.mxu1 %v1125_v49  ;;  %685 = vmatprep.mubr.bf16.mxu0 %v49_v16 }
  0x27   :  { %726 = vmatprep.mubr.bf16.mxu1 %v51_v17 }
  0x28   :  { %1023 = vmatpush3.bf16.msra.mxu0 %v1126_v50 }
  0x29   :  { %1045 = vmatpush3.bf16.msra.mxu1 %v1127_v51  ;;  %1024 = vmatprep.subr.bf16.mxu0 %v1128_v52 }
  0x2a   :  { %1046 = vmatprep.subr.bf16.mxu1 %v1129_v53 }
  0x2c   :  { %1025 = vmatpush3.bf16.msra.mxu0 %v1130_v54 }
  0x2d   :  { %1047 = vmatpush3.bf16.msra.mxu1 %v1131_v55  ;;  %1026 = vmatprep.subr.bf16.mxu0 %v1132_v56 }
  0x2e   :  { %1048 = vmatprep.subr.bf16.mxu1 %v1133_v57 }
  0x30   :  { %1027 = vmatpush3.bf16.msra.mxu0 %v1134_v58 }
  0x31   :  { %1049 = vmatpush3.bf16.msra.mxu1 %v1135_v59  ;;  %1028 = vmatprep.subr.bf16.mxu0 %v1136_v60 }
  0x32   :  { %1050 = vmatprep.subr.bf16.mxu1 %v1137_v61 }
  0x34   :  { %1029 = vmatpush3.bf16.msra.mxu0 %v1138_v62 }
  0x35   :  { %1051 = vmatpush3.bf16.msra.mxu1 %v1139_v63  ;;  %1030 = vmatprep.subr.bf16.mxu0 %v1140_v0 }
  0x36   :  { %1052 = vmatprep.subr.bf16.mxu1 %v1141_v1 }
  0x38   :  { %1031 = vmatpush3.bf16.msra.mxu0 %v1142_v2 }
  0x39   :  { %1053 = vmatpush3.bf16.msra.mxu1 %v1143_v3  ;;  %1032 = vmatprep.subr.bf16.mxu0 %v1144_v4 }
  0x3a   :  { %1054 = vmatprep.subr.bf16.mxu1 %v1145_v5 }
  0x3c   :  { %1033 = vmatpush3.bf16.msra.mxu0 %v1146_v6 }
  0x3d   :  { %1055 = vmatpush3.bf16.msra.mxu1 %v1147_v7  ;;  %1034 = vmatprep.subr.bf16.mxu0 %v1148_v8 }
  0x3e   :  { %1056 = vmatprep.subr.bf16.mxu1 %v1149_v9 }
  0x40   :  { %1035 = vmatpush3.bf16.msra.mxu0 %v1150_v10 }
  0x41   :  { %1057 = vmatpush3.bf16.msra.mxu1 %v1151_v11 }
  0x43   :  { %686 = vmatmul.mubr.bf16.vlgmr.msra.gmra.mxu0 %v48_v21 }
  0x44   :  { %12 = vsyncpa [#allocation3], 0  ;;  %727 = vmatmul.mubr.bf16.vlgmr.msra.gmra.mxu1 %v50_v23  ;;  %v1152_v24 = vld [vmem:[%s1486_s3 + $0x8] sm:$0xff]   ;;  %v1177_v25 = vmov 0.0   ;;  %v1153_v26 = vld [vmem:[%s1486_s3] sm:$0xff]   ;;  %vm1178_vm0 = vmmov 0  }
  0x45   :  { %1069 = vmatprep.subr.bf16.mxu0 %v1177_v25  ;;  %1077 = vmatprep.subr.bf16.mxu1 %v1177_v25  ;;  %v895_v34 = vld [vmem:[%s1485_s2] ss:$0 sm:$0xff]  ;;  %vm761_vm1 = vcmask 261120   ;;  %vm824_vm2 = vcmask 130048  }
  0x46   :  { %1070 = vmatpush3.bf16.msra.mxu0 %v1152_v24  ;;  %1073 = vmatprep.mubr.msk.bf16.mxu0 %vm1178_vm0, %v1177_v25  ;;  %v1154_v63 = vld [vmem:[%s1488_s5] sm:$0xff]   ;;  %s1179_s5 = smov [#allocation2]  }
  0x47   :  { %1071 = vmatprep.subr.bf16.mxu0 %v1177_v25  ;;  %1079 = vmatprep.mubr.msk.bf16.mxu1 %vm1178_vm0, %v1177_v25  ;;  %v960_v0 = vld [vmem:[%s1487_s4] ss:$0 sm:$0xff]  ;;  %s884_s4 = sshll.u32 %s1179_s5, 4  ;;  %s885_s4 = int_to_ptr.vmem [resolvable:$true] %s884_s4 }
  0x48   :  { %1078 = vmatpush3.bf16.msra.mxu1 %v1154_v63  ;;  %v964_v11 = vld [vmem:[%s1489_s6] ss:$0 sm:$0xff]  ;;  %s1155_s8 = scalar_lea.vmem %s885_s4, 128  ;;  %p1160_p1 = scmp.lt.s32.totalorder %s885_s4, %s885_s4 }
  0x49   :  { %p1156_p0 = scmp.ne.s32.totalorder %s885_s4, %s1155_s8  ;;  %p1161_p2 = scmp.lt.s32.totalorder %s1155_s8, %s1155_s8 }
  0x4a   :  { %1072 = vmatpush3.bf16.msra.mxu0 %v1153_v26 }
  0x4b   :  { %p1162_p3 = por %p1161_p2, %p1160_p1 }
  0x4d   :  { %p1163_p4 = pnand %p1162_p3, %p1156_p0 }
  0xe3   :  { %v992_v27 = vpop.f32.mrf.mxu0 }
  0xe4   :  { %v1014_v28 = vpop.f32.mrf.mxu1 }
  0xe5   :  { %v993_v29 = vpop.f32.mrf.mxu0 }
  0xe6   :  { %v1015_v30 = vpop.f32.mrf.mxu1  ;;  %v994_v32 = vadd.f32 %v993_v29, %v992_v27 }
  0xe7   :  { %v995_v31 = vpop.f32.mrf.mxu0  ;;  %v1016_v37 = vadd.f32 %v1015_v30, %v1014_v28 }
  0xe8   :  { %v1017_v33 = vpop.f32.mrf.mxu1  ;;  %v606_v36 = vadd.f32 %v994_v32, %v895_v34 }
  0xe9   :  { %v996_v35 = vpop.f32.mrf.mxu0 }
  0xea   :  { %v997_v38 = vadd.f32 %v996_v35, %v995_v31  ;;  %v1018_v39 = vpop.f32.mrf.mxu1  ;;  %v647_v43 = vadd.f32 %v1016_v37, %v606_v36 }
  0xeb   :  { %v1019_v48 = vadd.f32 %v1018_v39, %v1017_v33 }
  0xec   :  { %v609_v44 = vadd.f32 %v997_v38, %v895_v34 }
  0xee   :  { %v650_v52 = vadd.f32 %v1019_v48, %v609_v44 }
 0x103   :  { %v1036_v40 = vpop.f32.mrf.mxu0 }
 0x104   :  { %v1058_v41 = vpop.f32.mrf.mxu1 }
 0x105   :  { %v1037_v42 = vpop.f32.mrf.mxu0 }
 0x106   :  { %v1038_v45 = vadd.f32 %v1037_v42, %v1036_v40  ;;  %v1059_v46 = vpop.f32.mrf.mxu1 }
 0x107   :  { %v1039_v47 = vpop.f32.mrf.mxu0  ;;  %v1060_v53 = vadd.f32 %v1059_v46, %v1058_v41 }
 0x108   :  { %v688_v49 = vadd.f32 %v1038_v45, %v647_v43  ;;  %v1061_v50 = vpop.f32.mrf.mxu1 }
 0x109   :  { %v1040_v51 = vpop.f32.mrf.mxu0 }
 0x10a   :  { %v1041_v54 = vadd.f32 %v1040_v51, %v1039_v47  ;;  %v1062_v55 = vpop.f32.mrf.mxu1  ;;  %v729_v56 = vadd.f32 %v1060_v53, %v688_v49 }
 0x10b   :  { %v1063_v58 = vadd.f32 %v1062_v55, %v1061_v50 }
 0x10c   :  { %v691_v57 = vadd.f32 %v1041_v54, %v650_v52  ;;  %v735_v60 = vmax.f32 %v729_v56, 0.0 }
 0x10e   :  { %v732_v59 = vadd.f32 %v1063_v58, %v691_v57 }
 0x110   :  { %v736_v61 = vmax.f32 %v732_v59, 0.0 }
 0x112   :  { %v737_v62 = vpack.c.bf16 %v736_v61, %v735_v60 }
 0x114   :  { %1074 = vmatmul.mubr.msk.bf16.vlgmr.msra.gmra.mxu0 %vm761_vm1, %v737_v62 }
 0x1d4   :  { %v799_v1 = vpop.f32.mrf.mxu0 }
 0x1d5   :  { %v800_v3 = vadd.f32 %v960_v0, %v799_v1 }
 0x1d6   :  { %v1075_v2 = vpop.f32.mrf.mxu0 }
 0x1d7   :  { %v806_v7 = vmax.f32 %v800_v3, 0.0 }
 0x1d8   :  { %v802_v4 = vpop.f32.mrf.mxu0 }
 0x1d9   :  { %v803_v5 = vadd.f32 %v960_v0, %v802_v4 }
 0x1da   :  { %v1076_v6 = vpop.f32.mrf.mxu0 }
 0x1db   :  { %v807_v8 = vmax.f32 %v803_v5, 0.0 }
 0x1dd   :  { %v808_v9 = vpack.c.bf16 %v807_v8, %v806_v7 }
 0x1df   :  { %1080 = vmatmul.mubr.msk.bf16.vlgmr.msra.gmra.mxu1 %vm824_vm2, %v808_v9 }
 0x29f   :  { %v862_v10 = vpop.f32.mrf.mxu1 }
 0x2a0   :  { %v863_v14 = vadd.f32 %v964_v11, %v862_v10 }
 0x2a1   :  { %v1081_v12 = vpop.f32.mrf.mxu1 }
 0x2a3   :  { %v865_v13 = vpop.f32.mrf.mxu1 }
 0x2a4   :  { %v866_v15 = vadd.f32 %v964_v11, %v865_v13 }
 0x2a5   :  { %v1082_v16 = vpop.f32.mrf.mxu1 }
 0x2a6   :  { %v974_v17 = vpack.c.bf16 %v866_v15, %v863_v14 }
 0x2a8   :  { %975 = vst [vmem:[#allocation2] sm:$0xff] %v974_v17  }
 0x2a9   :  { %1166 = shalt.err (!%p1163_p4)
}
 0x2aa   :  { %s1180_s9 = smov 64   ;;  %s1181_s10 = smov 4  }
 0x2ab   :  { %890 = dma.vmem_to_hbm [thread:$0]  %s885_s4, 128, %s1490_s7, [#allocation3], %s1180_s9, %s1180_s9, %s1181_s10  }
 0x2ac   :  { %1175 = dma.done.wait [#allocation3], 128  }
 0x2ad   :  { %1176 = vsyncadd [#allocation3], 4294967168 }
 0x2ae   :  { %894 = vsyncpa [#allocation3], 1 }

</bundles_post_ra>
